<compile_context>
chip_gen: v6e
topology: v6e:2x2x1
jax: 0.10.0
libtpu: 0.0.40
codegen_flags: <defaults>
</compile_context>

<pallas_src>
import jax
import jax.numpy as jnp
from jax.experimental import pallas as pl
from jax.experimental.pallas import tpu as pltpu

# ---- static problem sizes (small, consistent with the module) ----
C = 3                                      # input_channels (= groups = out_channels)
H = 16                                     # obs_shape spatial height
W = 16                                     # obs_shape spatial width
KS = 2                                     # kernel_size
STRIDE = 1
SIZE = (H - (KS - 1) - 1) // STRIDE + 1    # 15 = conv output side
OUTPUT_SIZE = 96
OUT3 = OUTPUT_SIZE // 3                    # 32 features per head
COUT = 3 * OUT3                            # 96 real output features
COUT_PAD = 128                             # lane-dense padded output width
HW = H * W                                 # 256 flat positions per channel
CHW = C * HW                               # 768 flat positions total
XPAD = 128                                 # right-pad so shifted slices stay in-bounds (768+128=896)


def simple_cnn_kernel(xp_ref, wc_ref, wl_ref, bl_ref, o_ref):
    """Fused depthwise 2x2 conv -> tanh -> fused 3-head Linear -> tanh.

    xp_ref : (B, CHW + XPAD) f32 VMEM  flat input, zero-padded on the right
    wc_ref : (5, CHW)        f32 VMEM  per-lane conv tap vectors [w00,w01,w10,w11,bias]
    wl_ref : (CHW, COUT_PAD) bf16 VMEM block-diagonal fused linear weight
                                       (zero rows at invalid conv positions,
                                        zero cols 96..127 for lane padding)
    bl_ref : (1, COUT_PAD)   f32 VMEM  fused linear bias (zero-padded)
    o_ref  : (B, COUT_PAD)   f32 VMEM  lane-dense output (cols 96..127 are junk-free zeros)
    """
    # Four shifted views of the flat input: taps (0,0),(0,1),(1,0),(1,1) map to
    # flat offsets 0, 1, W, W+1.  Positions whose shift crosses a row/channel
    # boundary are invalid conv outputs and get zero rows in wl_ref.
    s00 = xp_ref[:, 0:CHW]
    s01 = xp_ref[:, 1:CHW + 1]
    s10 = xp_ref[:, W:CHW + W]
    s11 = xp_ref[:, W + 1:CHW + W + 1]

    # Elementwise conv + tanh stay in f32 (v5e VPU/EUP have no bf16 path).
    conv = (wc_ref[0:1, :] * s00 + wc_ref[1:2, :] * s01
            + wc_ref[2:3, :] * s10 + wc_ref[3:4, :] * s11
            + wc_ref[4:5, :])                                  # (B, CHW) f32
    act = jnp.tanh(conv)

    # Single bf16 MXU contraction (f32 accumulate) replaces the 3 Linear heads.
    acc = jnp.dot(act.astype(jnp.bfloat16), wl_ref[...],
                  preferred_element_type=jnp.float32)          # (B, COUT_PAD) f32
    o_ref[...] = jnp.tanh(acc + bl_ref[...]).astype(o_ref.dtype)


def pack_params(w_conv, b_conv, w_red, b_red, w_green, b_green, w_blue, b_blue):
    """One-time repack of PyTorch-layout parameters into kernel layouts."""
    # Conv taps -> per-lane vectors (5, CHW): lane c*HW+p carries channel c's tap.
    taps = w_conv.reshape(C, KS * KS).T.astype(jnp.float32)           # (4, C)
    taps = jnp.concatenate([taps, b_conv.reshape(1, C).astype(jnp.float32)], axis=0)
    wc_pack = jnp.repeat(taps, HW, axis=1)                            # (5, CHW) f32

    # Linear heads (OUT3, SIZE*SIZE) -> one block-diagonal (CHW, COUT_PAD) slab.
    # Row index is the flat *input-grid* position c*H*W + i*W + j; rows with
    # i==SIZE or j==SIZE are zero (mask invalid conv outputs); columns 96..127
    # are zero lane padding.  Stored bf16 to halve the dominant weight DMA.
    heads = jnp.stack([w_red, w_green, w_blue], axis=0)               # (C, OUT3, 225)
    wt = jnp.transpose(heads, (0, 2, 1)).reshape(C, SIZE, SIZE, OUT3)
    wt = jnp.pad(wt, ((0, 0), (0, H - SIZE), (0, W - SIZE), (0, 0)))  # (C, H, W, OUT3)
    wt = wt.reshape(C, HW, OUT3).astype(jnp.float32)
    blocks = []
    for c in range(C):
        row = [jnp.zeros((HW, OUT3), jnp.float32) for _ in range(C)]
        row[c] = wt[c]
        blocks.append(jnp.concatenate(row, axis=1))                   # (HW, COUT)
    wl = jnp.concatenate(blocks, axis=0)                              # (CHW, COUT)
    wl_pack = jnp.pad(wl, ((0, 0), (0, COUT_PAD - COUT))).astype(jnp.bfloat16)  # (CHW, 128) bf16

    bl = jnp.concatenate([b_red, b_green, b_blue]).reshape(1, COUT).astype(jnp.float32)
    bl_pack = jnp.pad(bl, ((0, 0), (0, COUT_PAD - COUT)))             # (1, 128) f32
    return wc_pack, wl_pack, bl_pack


@jax.jit
def simple_cnn(x, wc_pack, wl_pack, bl_pack):
    """x: (B, C, H, W) float32; packed params from pack_params(). Returns (B, 96)."""
    b = x.shape[0]
    xf = x.astype(jnp.float32).reshape(b, CHW)         # free (contiguous) reshape
    xp = jnp.pad(xf, ((0, 0), (0, XPAD)))              # lane-dense + slice headroom
    out = pl.pallas_call(
        simple_cnn_kernel,
        out_shape=jax.ShapeDtypeStruct((b, COUT_PAD), jnp.float32),
        in_specs=[
            pl.BlockSpec(memory_space=pltpu.VMEM),     # xp
            pl.BlockSpec(memory_space=pltpu.VMEM),     # conv tap vectors (f32)
            pl.BlockSpec(memory_space=pltpu.VMEM),     # fused linear weight (bf16)
            pl.BlockSpec(memory_space=pltpu.VMEM),     # fused linear bias (f32)
        ],
        out_specs=pl.BlockSpec(memory_space=pltpu.VMEM),
    )(xp, wc_pack, wl_pack, bl_pack)
    return out[:, :COUT]                               # drop the 32 lane-padding columns


def reference(x, w_conv, b_conv, w_red, b_red, w_green, b_green, w_blue, b_blue):
    """Pure-JAX mirror of the PyTorch forward pass (sanity check)."""
    b = x.shape[0]
    conv = jnp.stack([
        (w_conv[c, 0, 0, 0] * x[:, c, 0:SIZE, 0:SIZE]
         + w_conv[c, 0, 0, 1] * x[:, c, 0:SIZE, 1:SIZE + 1]
         + w_conv[c, 0, 1, 0] * x[:, c, 1:SIZE + 1, 0:SIZE]
         + w_conv[c, 0, 1, 1] * x[:, c, 1:SIZE + 1, 1:SIZE + 1]
         + b_conv[c])
        for c in range(C)], axis=1)                                   # (B, C, 15, 15)
    a = jnp.tanh(conv).reshape(b, C * SIZE * SIZE)
    red, green, blue = jnp.split(a, 3, axis=1)
    out = jnp.concatenate([red @ w_red.T + b_red,
                           green @ w_green.T + b_green,
                           blue @ w_blue.T + b_blue], axis=1)
    return jnp.tanh(out)


if __name__ == "__main__":
    key = jax.random.PRNGKey(0)
    kx, kwc, kbc, kr, kbr, kg, kbg, kb, kbb = jax.random.split(key, 9)

    # Deterministic synthetic inputs/params (shapes from the module __init__).
    # B=8 fills a full sublane group; the kernel accepts any batch size.
    B = 8
    x = jax.random.normal(kx, (B, C, H, W), dtype=jnp.float32)
    w_conv = jax.random.normal(kwc, (C, 1, KS, KS), dtype=jnp.float32) * 0.5
    b_conv = jax.random.normal(kbc, (C,), dtype=jnp.float32) * 0.1
    w_red = jax.random.normal(kr, (OUT3, SIZE * SIZE), dtype=jnp.float32) * 0.05
    b_red = jax.random.normal(kbr, (OUT3,), dtype=jnp.float32) * 0.1
    w_green = jax.random.normal(kg, (OUT3, SIZE * SIZE), dtype=jnp.float32) * 0.05
    b_green = jax.random.normal(kbg, (OUT3,), dtype=jnp.float32) * 0.1
    w_blue = jax.random.normal(kb, (OUT3, SIZE * SIZE), dtype=jnp.float32) * 0.05
    b_blue = jax.random.normal(kbb, (OUT3,), dtype=jnp.float32) * 0.1

    # One-time parameter repacking (hoisted out of the per-call path).
    packed = pack_params(w_conv, b_conv, w_red, b_red, w_green, b_green, w_blue, b_blue)
    wc_pack, wl_pack, bl_pack = jax.block_until_ready(packed)

    out = simple_cnn(x, wc_pack, wl_pack, bl_pack)
    out = jax.block_until_ready(out)

    ref = reference(x, w_conv, b_conv, w_red, b_red, w_green, b_green, w_blue, b_blue)
    assert out.shape == (B, COUT)
    max_err = float(jnp.max(jnp.abs(out - ref)))
    # bf16 weight path with f32 accumulation: 1e-2 tolerance leaves safe margin.
    assert jnp.allclose(out, ref, atol=1e-2, rtol=1e-2), max_err

    print("KERNEL_OK")
</pallas_src>

<mosaic_0001>
module attributes {stable_mosaic.version = 11 : i64} {
  func.func @simple_cnn_kernel(%arg0: memref<8x896xf32, #tpu.memory_space<vmem>>, %arg1: memref<5x768xf32, #tpu.memory_space<vmem>>, %arg2: memref<768x128xbf16, #tpu.memory_space<vmem>>, %arg3: memref<1x128xf32, #tpu.memory_space<vmem>>, %arg4: memref<8x128xf32, #tpu.memory_space<vmem>>) attributes {dimension_semantics = [], scalar_prefetch = 0 : i64, scratch_operands = 0 : i64, tpu.core_type = #tpu.core_type<tc>} {
    %c0 = arith.constant 0 : index
    %c0_0 = arith.constant 0 : index
    %0 = vector.load %arg0[%c0, %c0_0] : memref<8x896xf32, #tpu.memory_space<vmem>>, vector<8x768xf32>
    %c0_1 = arith.constant 0 : index
    %c1 = arith.constant 1 : index
    %1 = vector.load %arg0[%c0_1, %c1] : memref<8x896xf32, #tpu.memory_space<vmem>>, vector<8x768xf32>
    %c0_2 = arith.constant 0 : index
    %c16 = arith.constant 16 : index
    %2 = vector.load %arg0[%c0_2, %c16] : memref<8x896xf32, #tpu.memory_space<vmem>>, vector<8x768xf32>
    %c0_3 = arith.constant 0 : index
    %c17 = arith.constant 17 : index
    %3 = vector.load %arg0[%c0_3, %c17] : memref<8x896xf32, #tpu.memory_space<vmem>>, vector<8x768xf32>
    %c0_4 = arith.constant 0 : index
    %c0_5 = arith.constant 0 : index
    %4 = vector.load %arg1[%c0_4, %c0_5] : memref<5x768xf32, #tpu.memory_space<vmem>>, vector<1x768xf32>
    %5 = vector.broadcast %4 : vector<1x768xf32> to vector<8x768xf32>
    %6 = arith.mulf %5, %0 : vector<8x768xf32>
    %c1_6 = arith.constant 1 : index
    %c0_7 = arith.constant 0 : index
    %7 = vector.load %arg1[%c1_6, %c0_7] : memref<5x768xf32, #tpu.memory_space<vmem>>, vector<1x768xf32>
    %8 = vector.broadcast %7 : vector<1x768xf32> to vector<8x768xf32>
    %9 = arith.mulf %8, %1 : vector<8x768xf32>
    %10 = arith.addf %6, %9 : vector<8x768xf32>
    %c2 = arith.constant 2 : index
    %c0_8 = arith.constant 0 : index
    %11 = vector.load %arg1[%c2, %c0_8] : memref<5x768xf32, #tpu.memory_space<vmem>>, vector<1x768xf32>
    %12 = vector.broadcast %11 : vector<1x768xf32> to vector<8x768xf32>
    %13 = arith.mulf %12, %2 : vector<8x768xf32>
    %14 = arith.addf %10, %13 : vector<8x768xf32>
    %c3 = arith.constant 3 : index
    %c0_9 = arith.constant 0 : index
    %15 = vector.load %arg1[%c3, %c0_9] : memref<5x768xf32, #tpu.memory_space<vmem>>, vector<1x768xf32>
    %16 = vector.broadcast %15 : vector<1x768xf32> to vector<8x768xf32>
    %17 = arith.mulf %16, %3 : vector<8x768xf32>
    %18 = arith.addf %14, %17 : vector<8x768xf32>
    %c4 = arith.constant 4 : index
    %c0_10 = arith.constant 0 : index
    %19 = vector.load %arg1[%c4, %c0_10] : memref<5x768xf32, #tpu.memory_space<vmem>>, vector<1x768xf32>
    %20 = vector.broadcast %19 : vector<1x768xf32> to vector<8x768xf32>
    %21 = arith.addf %18, %20 : vector<8x768xf32>
    %22 = math.tanh %21 : vector<8x768xf32>
    %23 = arith.truncf %22 : vector<8x768xf32> to vector<8x768xbf16>
    %c0_11 = arith.constant 0 : index
    %c0_12 = arith.constant 0 : index
    %24 = vector.load %arg2[%c0_11, %c0_12] : memref<768x128xbf16, #tpu.memory_space<vmem>>, vector<768x128xbf16>
    %cst = arith.constant dense<0.000000e+00> : vector<8x128xf32>
    %25 = tpu.matmul %23, %24, %cst {dimension_numbers = #tpu.dot_dimension_numbers<[1], [0], [0], [1], [0, 0, 1, 1], [], []>} : vector<8x768xbf16>, vector<768x128xbf16>, vector<8x128xf32> -> vector<8x128xf32>
    %c0_13 = arith.constant 0 : index
    %c0_14 = arith.constant 0 : index
    %26 = vector.load %arg3[%c0_13, %c0_14] : memref<1x128xf32, #tpu.memory_space<vmem>>, vector<1x128xf32>
    %27 = vector.broadcast %26 : vector<1x128xf32> to vector<8x128xf32>
    %28 = arith.addf %25, %27 : vector<8x128xf32>
    %29 = math.tanh %28 : vector<8x128xf32>
    %c0_15 = arith.constant 0 : index
    %c0_16 = arith.constant 0 : index
    %30 = vector.load %arg4[%c0_15, %c0_16] : memref<8x128xf32, #tpu.memory_space<vmem>>, vector<8x128xf32>
    tpu.vector_store %arg4[%c0_15, %c0_16], %29 {strides = array<i32>} : memref<8x128xf32, #tpu.memory_space<vmem>>, vector<8x128xf32>,
    return
  }
}

</mosaic_0001>

<bundles_post_ra>
// kernel: simple_cnn.1
= control target key start
LH: loop header
LB: loop body
LE: loop exit
PB: predicated region body
PF: predicated region fallthrough
CT: control target
= control target key end

     0   :  { %s1092_s19 = smov 127   ;;  %s1093_s24 = smov 112   ;;  %s1473_s0 = inlined_call_operand.vmem [shape: f32[8,896], index: 0, kind: input, shape index: {}]   ;;  %s1474_s1 = inlined_call_operand.vmem [shape: f32[5,768], index: 1, kind: input, shape index: {}]   ;;  %s1475_s2 = inlined_call_operand.vmem [shape: bf16[768,128], index: 2, kind: input, shape index: {}]   ;;  %s1476_s3 = inlined_call_operand.vmem [shape: f32[1,128], index: 3, kind: input, shape index: {}]   ;;  %s1477_s4 = inlined_call_operand.hbm [shape: f32[8,128], index: 4, kind: output, shape index: {}]  }
   0x1   :  { %v1124_v0 = vld [vmem:[%s1473_s0 + $0x8] sm:$0xff]  ;;  %v1129_v1 = vld [vmem:[%s1473_s0] sm:$0xff]  ;;  %v1138_v2 = vld [vmem:[%s1473_s0 + $0x10] sm:$0xff]  ;;  %s1094_s9 = smov 111  }
   0x2   :  { %116 = vrot.lane.b32.xlu0 %v1124_v0, %s1092_s19  ;;  %114 = vrot.lane.b32.xlu1 %v1129_v1, %s1092_s19  ;;  %v1008_v3 = vld [vmem:[%s1475_s2 + $0x78] sm:$0xff]   ;;  %v1010_v5 = vld [vmem:[%s1475_s2 + $0x70] sm:$0xff]  }
   0x3   :  { %938 = vmatprep.subr.bf16.mxu0 %v1008_v3  ;;  %v1009_v4 = vld [vmem:[%s1475_s2 + $0x38] sm:$0xff]   ;;  %v1011_v6 = vld [vmem:[%s1475_s2 + $0x30] sm:$0xff]   ;;  %v1012_v7 = vld [vmem:[%s1475_s2 + $0x68] sm:$0xff]  }
   0x4   :  { %939 = vmatpush3.bf16.msra.mxu0 %v1009_v4  ;;  %v1013_v8 = vld [vmem:[%s1475_s2 + $0x28] sm:$0xff]   ;;  %v1173_v9 = vld [vmem:[%s1473_s0 + $0x18] sm:$0xff]  ;;  %v1014_v10 = vld [vmem:[%s1475_s2 + $0x60] sm:$0xff]  }
   0x5   :  { %940 = vmatprep.subr.bf16.mxu0 %v1010_v5  ;;  %v1181_v11 = vld [vmem:[%s1473_s0 + $0x20] sm:$0xff]  ;;  %v1186_v12 = vld [vmem:[%s1473_s0 + $0x28] sm:$0xff]  ;;  %v1016_v14 = vld [vmem:[%s1475_s2 + $0x58] sm:$0xff]  }
   0x6   :  { %118 = vrot.lane.b32.xlu0 %v1138_v2, %s1092_s19  ;;  %190 = vrot.lane.b32.xlu1 %v1124_v0, %s1093_s24  ;;  %v1015_v13 = vld [vmem:[%s1475_s2 + $0x20] sm:$0xff]   ;;  %v1017_v15 = vld [vmem:[%s1475_s2 + $0x18] sm:$0xff]  }
   0x7   :  { %v31_v16 = vld [vmem:[%s1473_s0 + $0x30] sm:$0xff]  ;;  %v1020_v18 = vld [vmem:[%s1475_s2 + $0xf8] sm:$0xff]   ;;  %v1022_v21 = vld [vmem:[%s1475_s2 + $0x48] sm:$0xff]  }
   0x8   :  { %941 = vmatpush3.bf16.msra.mxu0 %v1011_v6  ;;  %v1018_v17 = vld [vmem:[%s1475_s2 + $0x50] sm:$0xff]   ;;  %v1021_v19 = vld [vmem:[%s1475_s2 + $0xb8] sm:$0xff]   ;;  %960 = vmatprep.subr.bf16.mxu1 %v1020_v18  ;;  %v1023_v24 = vld [vmem:[%s1475_s2 + $0x8] sm:$0xff]  }
   0x9   :  { %942 = vmatprep.subr.bf16.mxu0 %v1012_v7  ;;  %v1019_v20 = vld [vmem:[%s1475_s2 + $0x10] sm:$0xff]   ;;  %961 = vmatpush3.bf16.msra.mxu1 %v1021_v19  ;;  %v1026_v25 = vld [vmem:[%s1475_s2 + $0x40] sm:$0xff]   ;;  %v1028_v26 = vld [vmem:[%s1475_s2 + $0xe8] sm:$0xff]  }
   0xa   :  { %192 = vrot.lane.b32.xlu0 %v1138_v2, %s1093_s24  ;;  %188 = vrot.lane.b32.xlu1 %v1129_v1, %s1093_s24  ;;  %v1024_v22 = vld [vmem:[%s1475_s2 + $0xf0] sm:$0xff]   ;;  %v1029_v27 = vld [vmem:[%s1475_s2 + $0xa8] sm:$0xff]  }
   0xb   :  { %v1025_v23 = vld [vmem:[%s1475_s2 + $0xb0] sm:$0xff]   ;;  %962 = vmatprep.subr.bf16.mxu1 %v1024_v22  ;;  %v1027_v28 = vld [vmem:[%s1475_s2] sm:$0xff]   ;;  %v1030_v29 = vld [vmem:[%s1475_s2 + $0x178] sm:$0xff]  }
   0xc   :  { %943 = vmatpush3.bf16.msra.mxu0 %v1013_v8  ;;  %v1032_v30 = vld [vmem:[%s1475_s2 + $0xe0] sm:$0xff]   ;;  %v1036_v32 = vld [vmem:[%s1475_s2 + $0xd8] sm:$0xff]   ;;  %v1040_v34 = vld [vmem:[%s1475_s2 + $0xd0] sm:$0xff]  }
   0xd   :  { %944 = vmatprep.subr.bf16.mxu0 %v1014_v10  ;;  %963 = vmatpush3.bf16.msra.mxu1 %v1025_v23  ;;  %v1033_v31 = vld [vmem:[%s1475_s2 + $0xa0] sm:$0xff]   ;;  %v1037_v33 = vld [vmem:[%s1475_s2 + $0x98] sm:$0xff]   ;;  %v1041_v35 = vld [vmem:[%s1475_s2 + $0x90] sm:$0xff]  }
   0xe   :  { %264 = vrot.lane.b32.xlu0 %v1124_v0, %s1094_s9  ;;  %266 = vrot.lane.b32.xlu1 %v1138_v2, %s1094_s9  ;;  %v1044_v36 = vld [vmem:[%s1475_s2 + $0xc8] sm:$0xff]   ;;  %v1048_v38 = vld [vmem:[%s1475_s2 + $0xc0] sm:$0xff]  }
   0xf   :  { %964 = vmatprep.subr.bf16.mxu1 %v1028_v26  ;;  %v1045_v37 = vld [vmem:[%s1475_s2 + $0x88] sm:$0xff]   ;;  %v1049_v39 = vld [vmem:[%s1475_s2 + $0x80] sm:$0xff]  }
  0x10   :  { %945 = vmatpush3.bf16.msra.mxu0 %v1015_v13 }
  0x11   :  { %946 = vmatprep.subr.bf16.mxu0 %v1016_v14  ;;  %965 = vmatpush3.bf16.msra.mxu1 %v1029_v27 }
  0x12   :  { %262 = vrot.lane.b32.xlu0 %v1129_v1, %s1094_s9  ;;  %120 = vrot.lane.b32.xlu1 %v1173_v9, %s1092_s19 }
  0x13   :  { %966 = vmatprep.subr.bf16.mxu1 %v1032_v30 }
  0x14   :  { %947 = vmatpush3.bf16.msra.mxu0 %v1017_v15 }
  0x15   :  { %948 = vmatprep.subr.bf16.mxu0 %v1018_v17  ;;  %967 = vmatpush3.bf16.msra.mxu1 %v1033_v31 }
  0x16   :  { %122 = vrot.lane.b32.xlu0 %v1181_v11, %s1092_s19  ;;  %124 = vrot.lane.b32.xlu1 %v1186_v12, %s1092_s19 }
  0x17   :  { %968 = vmatprep.subr.bf16.mxu1 %v1036_v32 }
  0x18   :  { %949 = vmatpush3.bf16.msra.mxu0 %v1019_v20 }
  0x19   :  { %950 = vmatprep.subr.bf16.mxu0 %v1022_v21  ;;  %969 = vmatpush3.bf16.msra.mxu1 %v1037_v33 }
  0x1a   :  { %126 = vrot.lane.b32.xlu0 %v31_v16, %s1092_s19  ;;  %194 = vrot.lane.b32.xlu1 %v1173_v9, %s1093_s24 }
  0x1b   :  { %970 = vmatprep.subr.bf16.mxu1 %v1040_v34 }
  0x1c   :  { %951 = vmatpush3.bf16.msra.mxu0 %v1023_v24 }
  0x1d   :  { %952 = vmatprep.subr.bf16.mxu0 %v1026_v25  ;;  %971 = vmatpush3.bf16.msra.mxu1 %v1041_v35 }
  0x1e   :  { %196 = vrot.lane.b32.xlu0 %v1181_v11, %s1093_s24  ;;  %198 = vrot.lane.b32.xlu1 %v1186_v12, %s1093_s24 }
  0x1f   :  { %972 = vmatprep.subr.bf16.mxu1 %v1044_v36 }
  0x20   :  { %953 = vmatpush3.bf16.msra.mxu0 %v1027_v28 }
  0x21   :  { %982 = vmatprep.subr.bf16.mxu0 %v1030_v29  ;;  %973 = vmatpush3.bf16.msra.mxu1 %v1045_v37 }
  0x22   :  { %200 = vrot.lane.b32.xlu0 %v31_v16, %s1093_s24  ;;  %268 = vrot.lane.b32.xlu1 %v1173_v9, %s1094_s9 }
  0x23   :  { %974 = vmatprep.subr.bf16.mxu1 %v1048_v38 }
  0x25   :  { %975 = vmatpush3.bf16.msra.mxu1 %v1049_v39 }
  0x26   :  { %270 = vrot.lane.b32.xlu0 %v1181_v11, %s1094_s9  ;;  %272 = vrot.lane.b32.xlu1 %v1186_v12, %s1094_s9 }
  0x2a   :  { %274 = vrot.lane.b32.xlu0 %v31_v16, %s1094_s9 }
  0x2b   :  { %9 = vsyncpa [#allocation3], 0  ;;  %v36_v40 = vlaneseq  ;;  %v32_v41 = vld [vmem:[%s1474_s1] ss:$8 sm:$0xf]  ;;  %vm128_vm0 = vcmask 1039360  }
  0x2c   :  { %v33_v42 = vld [vmem:[%s1474_s1] ss:$8 sm:$0x30]  ;;  %v881_v44 = vld [vmem:[%s1474_s1 + $0x1] ss:$8 sm:$0xf] }
  0x2d   :  { %v1298_v43 = vshrl.u32 %v36_v40, 7  ;;  %v882_v45 = vld [vmem:[%s1474_s1 + $0x1] ss:$8 sm:$0x30]  ;;  %v1313_v51 = vor.u32 %v33_v42, %v32_v41  ;;  %vm202_vm1 = vcmask 916480   ;;  %vm276_vm2 = vcmask 908288  }
  0x2e   :  { %v883_v46 = vld [vmem:[%s1474_s1 + $0x2] ss:$8 sm:$0xf]  ;;  %v1315_v52 = vor.u32 %v882_v45, %v881_v44  ;;  %v885_v54 = vld [vmem:[%s1474_s1 + $0x3] ss:$8 sm:$0xf] }
  0x2f   :  { %v884_v47 = vld [vmem:[%s1474_s1 + $0x2] ss:$8 sm:$0x30]  ;;  %v42_v50 = vsub.s32 1, %v1298_v43  ;;  %v38_v56 = vsub.s32 0, %v1298_v43  ;;  %v1355_v40 = vsub.s32 2, %v1298_v43 }
  0x30   :  { %v1317_v53 = vor.u32 %v884_v47, %v883_v46  ;;  %v886_v55 = vld [vmem:[%s1474_s1 + $0x3] ss:$8 sm:$0x30]  ;;  %v887_v3 = vld [vmem:[%s1474_s1 + $0x4] ss:$8 sm:$0xf] }
  0x31   :  { %v43_v57 = vrot.slane %v1313_v51, %v42_v50  ;;  %v84_v58 = vrot.slane %v1315_v52, %v42_v50  ;;  %v1330_v63 = vor.u32 %v886_v55, %v885_v54  ;;  %v888_v4 = vld [vmem:[%s1474_s1 + $0x4] ss:$8 sm:$0x30]  ;;  %v39_v5 = vrot.slane %v1313_v51, %v38_v56 }
  0x32   :  { %v165_v62 = vrot.slane %v1317_v53, %v42_v50  ;;  %v80_v6 = vrot.slane %v1315_v52, %v38_v56  ;;  %v161_v17 = vrot.slane %v1317_v53, %v38_v56  ;;  %v1345_v19 = vor.u32 %v888_v4, %v887_v3 }
  0x33   :  { %v67_v7 = vmul.f32 %v43_v57, %v1124_v0  ;;  %v239_v18 = vrot.slane %v1330_v63, %v42_v50  ;;  %v66_v21 = vmul.f32 %v39_v5, %v1129_v1  ;;  %v235_v26 = vrot.slane %v1330_v63, %v38_v56 }
  0x34   :  { %v313_v30 = vrot.slane %v1345_v19, %v42_v50  ;;  %v309_v36 = vrot.slane %v1345_v19, %v38_v56  ;;  %v1358_v44 = vsub.s32 3, %v1298_v43  ;;  %v47_v46 = vrot.slane %v1313_v51, %v1355_v40 }
  0x35   :  { %v88_v47 = vrot.slane %v1315_v52, %v1355_v40 }
  0x36   :  { %v51_v55 = vrot.slane %v1313_v51, %v1358_v44  ;;  %v92_v56 = vrot.slane %v1315_v52, %v1358_v44 }
  0x74   :  { %v117_v48 = vpop.permute.xlu0 %116  ;;  %v115_v49 = vpop.permute.xlu1 %114 }
  0x75   :  { %v129_v14 = vsel %vm128_vm0, %v115_v49, %v117_v48 }
  0x76   :  { %v141_v0 = vmul.f32 %v129_v14, %v80_v6  ;;  %v69_v6 = vmul.f32 %v51_v55, %v1173_v9 }
  0x78   :  { %v119_v59 = vpop.permute.xlu0 %118  ;;  %v191_v60 = vpop.permute.xlu1 %190  ;;  %v147_v31 = vadd.f32 %v141_v0, %v66_v21  ;;  %v247_v0 = vrot.slane %v1330_v63, %v1358_v44 }
  0x79   :  { %v130_v61 = vsel %vm128_vm0, %v117_v48, %v119_v59  ;;  %v1365_v48 = vsub.s32 5, %v1298_v43 }
  0x7a   :  { %v142_v8 = vmul.f32 %v130_v61, %v84_v58  ;;  %v169_v58 = vrot.slane %v1317_v53, %v1355_v40 }
  0x7c   :  { %v193_v10 = vpop.permute.xlu0 %192  ;;  %v189_v13 = vpop.permute.xlu1 %188  ;;  %v148_v22 = vadd.f32 %v142_v8, %v67_v7  ;;  %v100_v8 = vrot.slane %v1315_v52, %v1365_v48 }
  0x7d   :  { %v204_v15 = vsel %vm202_vm1, %v191_v60, %v193_v10  ;;  %v203_v20 = vsel %vm202_vm1, %v189_v13, %v191_v60  ;;  %v1376_v60 = vsub.s32 4, %v1298_v43 }
  0x7e   :  { %v216_v16 = vmul.f32 %v204_v15, %v165_v62  ;;  %v215_v28 = vmul.f32 %v203_v20, %v161_v17  ;;  %v68_v62 = vmul.f32 %v47_v46, %v1138_v2  ;;  %v243_v2 = vrot.slane %v1330_v63, %v1355_v40 }
  0x7f   :  { %v55_v14 = vrot.slane %v1313_v51, %v1376_v60  ;;  %v96_v15 = vrot.slane %v1315_v52, %v1376_v60 }
  0x80   :  { %v265_v23 = vpop.permute.xlu0 %264  ;;  %v267_v24 = vpop.permute.xlu1 %266  ;;  %v222_v27 = vadd.f32 %v216_v16, %v148_v22  ;;  %v221_v1 = vadd.f32 %v215_v28, %v147_v31 }
  0x81   :  { %v278_v25 = vsel %vm276_vm2, %v265_v23, %v267_v24 }
  0x82   :  { %v290_v29 = vmul.f32 %v278_v25, %v239_v18  ;;  %v181_v18 = vrot.slane %v1317_v53, %v1365_v48 }
  0x84   :  { %v296_v32 = vadd.f32 %v290_v29, %v222_v27  ;;  %v263_v33 = vpop.permute.xlu0 %262  ;;  %v121_v34 = vpop.permute.xlu1 %120 }
  0x85   :  { %v277_v35 = vsel %vm276_vm2, %v263_v33, %v265_v23  ;;  %v131_v54 = vsel %vm128_vm0, %v119_v59, %v121_v34  ;;  %v59_v59 = vrot.slane %v1313_v51, %v1365_v48 }
  0x86   :  { %v289_v37 = vmul.f32 %v277_v35, %v235_v26  ;;  %v337_v38 = vadd.f32 %v313_v30, %v296_v32  ;;  %v143_v3 = vmul.f32 %v131_v54, %v88_v47  ;;  %v177_v30 = vrot.slane %v1317_v53, %v1376_v60 }
  0x87   :  { %v71_v17 = vmul.f32 %v59_v59, %v1186_v12  ;;  %v70_v12 = vmul.f32 %v55_v14, %v1181_v11  ;;  %v317_v32 = vrot.slane %v1345_v19, %v1355_v40  ;;  %v321_v40 = vrot.slane %v1345_v19, %v1358_v44  ;;  %v1038_v59 = vld [vmem:[%s1475_s2 + $0x168] sm:$0xff]   ;;  %v1046_v14 = vld [vmem:[%s1475_s2 + $0x158] sm:$0xff]  }
  0x88   :  { %v295_v39 = vadd.f32 %v289_v37, %v221_v1  ;;  %v123_v41 = vpop.permute.xlu0 %122  ;;  %v125_v42 = vpop.permute.xlu1 %124  ;;  %1056 = vtanh.f32 %v337_v38  ;;  %v149_v16 = vadd.f32 %v143_v3, %v68_v62 }
  0x89   :  { %v132_v57 = vsel %vm128_vm0, %v121_v34, %v123_v41  ;;  %v133_v51 = vsel %vm128_vm0, %v123_v41, %v125_v42 }
  0x8a   :  { %v336_v45 = vadd.f32 %v309_v36, %v295_v39  ;;  %v144_v7 = vmul.f32 %v132_v57, %v92_v56  ;;  %v145_v33 = vmul.f32 %v133_v51, %v96_v15  ;;  %v255_v36 = vrot.slane %v1330_v63, %v1365_v48  ;;  %v1031_v39 = vld [vmem:[%s1475_s2 + $0x138] sm:$0xff]   ;;  %v1055_v51 = vld [vmem:[%s1475_s2 + $0x100] sm:$0xff]  }
  0x8b   :  { %v329_v57 = vrot.slane %v1345_v19, %v1365_v48  ;;  %v1039_v48 = vld [vmem:[%s1475_s2 + $0x128] sm:$0xff]  }
  0x8c   :  { %1058 = vtanh.f32 %v336_v45  ;;  %v127_v49 = vpop.permute.xlu0 %126  ;;  %v195_v50 = vpop.permute.xlu1 %194  ;;  %v150_v23 = vadd.f32 %v144_v7, %v69_v6  ;;  %v325_v7 = vrot.slane %v1345_v19, %v1376_v60  ;;  %v1047_v19 = vld [vmem:[%s1475_s2 + $0x118] sm:$0xff]  }
  0x8d   :  { %v205_v61 = vsel %vm202_vm1, %v193_v10, %v195_v50  ;;  %v134_v13 = vsel %vm128_vm0, %v125_v42, %v127_v49  ;;  %v173_v10 = vrot.slane %v1317_v53, %v1358_v44  ;;  %v151_v49 = vadd.f32 %v145_v33, %v70_v12 }
  0x8e   :  { %v217_v43 = vmul.f32 %v205_v61, %v169_v58  ;;  %v146_v25 = vmul.f32 %v134_v13, %v100_v8  ;;  %v1035_v58 = vld [vmem:[%s1475_s2 + $0x130] sm:$0xff]  }
  0x90   :  { %v197_v4 = vpop.permute.xlu0 %196  ;;  %v199_v5 = vpop.permute.xlu1 %198  ;;  %v223_v26 = vadd.f32 %v217_v43, %v149_v16  ;;  %v152_v37 = vadd.f32 %v146_v25, %v71_v17  ;;  %v1042_v43 = vld [vmem:[%s1475_s2 + $0x160] sm:$0xff]   ;;  %v1052_v17 = vld [vmem:[%s1475_s2 + $0x148] sm:$0xff]  }
  0x91   :  { %v206_v9 = vsel %vm202_vm1, %v195_v50, %v197_v4  ;;  %v207_v53 = vsel %vm202_vm1, %v197_v4, %v199_v5 }
  0x92   :  { %v218_v27 = vmul.f32 %v206_v9, %v173_v10  ;;  %v219_v50 = vmul.f32 %v207_v53, %v177_v30  ;;  %v1043_v10 = vld [vmem:[%s1475_s2 + $0x120] sm:$0xff]   ;;  %v1051_v9 = vld [vmem:[%s1475_s2 + $0x110] sm:$0xff]  }
  0x94   :  { %v201_v20 = vpop.permute.xlu0 %200  ;;  %v269_v21 = vpop.permute.xlu1 %268  ;;  %v224_v41 = vadd.f32 %v218_v27, %v150_v23  ;;  %v1054_v23 = vld [vmem:[%s1475_s2 + $0x140] sm:$0xff]  }
  0x95   :  { %v1057_v22 = vpop.eup %1056  ;;  %v279_v52 = vsel %vm276_vm2, %v267_v24, %v269_v21  ;;  %v208_v31 = vsel %vm202_vm1, %v199_v5, %v201_v20  ;;  %v251_v24 = vrot.slane %v1330_v63, %v1376_v60  ;;  %v1034_v63 = vld [vmem:[%s1475_s2 + $0x170] sm:$0xff]   ;;  %v225_v5 = vadd.f32 %v219_v50, %v151_v49 }
  0x96   :  { %v291_v28 = vmul.f32 %v279_v52, %v243_v2  ;;  %v349_v29 = vpack.c.bf16 %v1057_v22, %v1057_v22  ;;  %v220_v42 = vmul.f32 %v208_v31, %v181_v18  ;;  %v1050_v60 = vld [vmem:[%s1475_s2 + $0x150] sm:$0xff]  }
  0x98   :  { %v297_v34 = vadd.f32 %v291_v28, %v223_v26  ;;  %v271_v35 = vpop.permute.xlu0 %270  ;;  %v273_v1 = vpop.permute.xlu1 %272  ;;  %777 = vmatprep.mubr.bf16.mxu0 %v349_v29  ;;  %v226_v61 = vadd.f32 %v220_v42, %v152_v37 }
  0x99   :  { %v1059_v11 = vpop.eup %1058  ;;  %v280_v38 = vsel %vm276_vm2, %v269_v21, %v271_v35  ;;  %v281_v47 = vsel %vm276_vm2, %v271_v35, %v273_v1 }
  0x9a   :  { %v292_v45 = vmul.f32 %v280_v38, %v247_v0  ;;  %v348_v46 = vpack.c.bf16 %v1059_v11, %v1059_v11  ;;  %v338_v54 = vadd.f32 %v317_v32, %v297_v34  ;;  %v293_v62 = vmul.f32 %v281_v47, %v251_v24  ;;  %v1053_v0 = vld [vmem:[%s1475_s2 + $0x108] sm:$0xff]   ;;  %v889_v34 = vld [vmem:[%s1476_s3] ss:$0 sm:$0xff]  ;;  %s1095_s2 = smov [#allocation2]  }
  0x9b   :  { %s873_s9 = sshll.u32 %s1095_s2, 4  ;;  %s874_s9 = int_to_ptr.vmem [resolvable:$true] %s873_s9 }
  0x9c   :  { %v298_v55 = vadd.f32 %v292_v45, %v224_v41  ;;  %v275_v56 = vpop.permute.xlu0 %274  ;;  %778 = vmatmul.mubr.bf16.vlgmr.msra.gmra.mxu0 %v348_v46  ;;  %1060 = vtanh.f32 %v338_v54  ;;  %v299_v8 = vadd.f32 %v293_v62, %v225_v5  ;;  %s1070_s19 = scalar_lea.vmem %s874_s9, 128  ;;  %p1075_p1 = scmp.lt.s32.totalorder %s874_s9, %s874_s9 }
  0x9d   :  { %v282_v44 = vsel %vm276_vm2, %v273_v1, %v275_v56  ;;  %983 = vmatpush3.bf16.msra.mxu0 %v1031_v39  ;;  %p1071_p0 = scmp.ne.s32.totalorder %s874_s9, %s1070_s19  ;;  %p1076_p2 = scmp.lt.s32.totalorder %s1070_s19, %s1070_s19 }
  0x9e   :  { %v294_v3 = vmul.f32 %v282_v44, %v255_v36  ;;  %984 = vmatprep.subr.bf16.mxu0 %v1034_v63  ;;  %v339_v4 = vadd.f32 %v321_v40, %v298_v55  ;;  %v340_v2 = vadd.f32 %v325_v7, %v299_v8 }
  0x9f   :  { %p1077_p3 = por %p1076_p2, %p1075_p1 }
  0xa0   :  { %v300_v6 = vadd.f32 %v294_v3, %v226_v61  ;;  %1062 = vtanh.f32 %v339_v4 }
  0xa1   :  { %985 = vmatpush3.bf16.msra.mxu0 %v1035_v58  ;;  %p1078_p4 = pnand %p1077_p3, %p1071_p0 }
  0xa2   :  { %v341_v13 = vadd.f32 %v329_v57, %v300_v6  ;;  %986 = vmatprep.subr.bf16.mxu0 %v1038_v59 }
  0xa4   :  { %1064 = vtanh.f32 %v341_v13 }
  0xa5   :  { %987 = vmatpush3.bf16.msra.mxu0 %v1039_v48  ;;  %1066 = vtanh.f32 %v340_v2 }
  0xa6   :  { %988 = vmatprep.subr.bf16.mxu0 %v1042_v43 }
  0xa9   :  { %989 = vmatpush3.bf16.msra.mxu0 %v1043_v10  ;;  %v1061_v15 = vpop.eup %1060 }
  0xaa   :  { %990 = vmatprep.subr.bf16.mxu0 %v1046_v14  ;;  %v350_v20 = vpack.c.bf16 %v1061_v15, %v1061_v15 }
  0xad   :  { %991 = vmatpush3.bf16.msra.mxu0 %v1047_v19  ;;  %v1063_v16 = vpop.eup %1062 }
  0xae   :  { %992 = vmatprep.subr.bf16.mxu0 %v1050_v60  ;;  %v351_v18 = vpack.c.bf16 %v1063_v16, %v1063_v16 }
  0xb0   :  { %817 = vmatprep.mubr.bf16.mxu1 %v351_v18 }
  0xb1   :  { %v1065_v21 = vpop.eup %1064  ;;  %993 = vmatpush3.bf16.msra.mxu0 %v1051_v9  ;;  %818 = vmatmul.mubr.bf16.vlgmr.msra.gmra.mxu1 %v350_v20 }
  0xb2   :  { %994 = vmatprep.subr.bf16.mxu0 %v1052_v17  ;;  %v353_v22 = vpack.c.bf16 %v1065_v21, %v1065_v21  ;;  %v1067_v25 = vpop.eup %1066 }
  0xb3   :  { %v352_v52 = vpack.c.bf16 %v1067_v25, %v1067_v25 }
  0xb4   :  { %857 = vmatprep.mubr.bf16.mxu0 %v353_v22 }
  0xb5   :  { %995 = vmatpush3.bf16.msra.mxu0 %v1053_v0 }
  0xb6   :  { %996 = vmatprep.subr.bf16.mxu0 %v1054_v23 }
  0xb9   :  { %997 = vmatpush3.bf16.msra.mxu0 %v1055_v51 }
  0xbc   :  { %858 = vmatmul.mubr.bf16.vlgmr.msra.gmra.mxu0 %v352_v52 }
 0x15c   :  { %v954_v26 = vpop.f32.mrf.mxu0 }
 0x15e   :  { %v955_v27 = vpop.f32.mrf.mxu0 }
 0x15f   :  { %v956_v33 = vadd.f32 %v955_v27, %v954_v26 }
 0x160   :  { %v957_v28 = vpop.f32.mrf.mxu0 }
 0x161   :  { %v780_v1 = vadd.f32 %v956_v33, %v889_v34 }
 0x162   :  { %v958_v29 = vpop.f32.mrf.mxu0 }
 0x171   :  { %v976_v12 = vpop.f32.mrf.mxu1 }
 0x173   :  { %v977_v30 = vpop.f32.mrf.mxu1 }
 0x174   :  { %v978_v35 = vadd.f32 %v977_v30, %v976_v12 }
 0x175   :  { %v979_v31 = vpop.f32.mrf.mxu1 }
 0x176   :  { %v820_v11 = vadd.f32 %v978_v35, %v780_v1 }
 0x177   :  { %v980_v32 = vpop.f32.mrf.mxu1 }
 0x17c   :  { %v998_v24 = vpop.f32.mrf.mxu0 }
 0x17e   :  { %v999_v36 = vpop.f32.mrf.mxu0 }
 0x17f   :  { %v1000_v37 = vadd.f32 %v999_v36, %v998_v24 }
 0x180   :  { %v1001_v53 = vpop.f32.mrf.mxu0 }
 0x181   :  { %v860_v38 = vadd.f32 %v1000_v37, %v820_v11 }
 0x182   :  { %v1002_v39 = vpop.f32.mrf.mxu0 }
 0x183   :  { %1068 = vtanh.f32 %v860_v38 }
 0x190   :  { %v1069_v40 = vpop.eup %1068 }
 0x191   :  { %866 = vst [vmem:[#allocation2] sm:$0xff] %v1069_v40 }
 0x192   :  { %1081 = shalt.err (!%p1078_p4)
}
 0x193   :  { %876 = dma.vmem_to_hbm [thread:$0]  %s874_s9, 128, %s1477_s4, [#allocation3]  }
 0x194   :  { %1090 = dma.done.wait [#allocation3], 128  }
 0x195   :  { %1091 = vsyncadd [#allocation3], 4294967168 }
 0x196   :  { %880 = vsyncpa [#allocation3], 1 }

</bundles_post_ra>
